<compile_context>
chip_gen: v5e
topology: v5e:2x2
jax: 0.10.0
libtpu: 0.0.40
codegen_flags: <defaults>
</compile_context>

<pallas_src>
import math
import jax
import jax.numpy as jnp
from jax.experimental import pallas as pl
from jax.experimental.pallas import tpu as pltpu


def _timestep_embedding_kernel(x_ref, w1_ref, b1_ref, w2_ref, b2_ref, o_ref):
    # linear_1: [TB, C] (bf16) @ [C, H] (bf16) -> f32 accumulation on the MXU.
    h = jnp.dot(x_ref[...], w1_ref[...], preferred_element_type=jnp.float32)
    h = h + b1_ref[...]
    # SiLU = h * sigmoid(h), sigmoid via a single tanh EUP push:
    #   sigmoid(h) = 0.5 * (tanh(0.5 * h) + 1)
    h = h * (0.5 * jnp.tanh(0.5 * h) + 0.5)
    # linear_2: cast activations back to bf16 so the MXU runs at native rate.
    out = jnp.dot(h.astype(w2_ref.dtype), w2_ref[...],
                  preferred_element_type=jnp.float32)
    out = out + b2_ref[...]
    o_ref[...] = out.astype(o_ref.dtype)


def prepare_params(w1, b1, w2, b2, *, compute_dtype=jnp.bfloat16):
    """One-time cast/reshape of the Linear parameters (hoisted out of the hot
    path so per-call invocations don't re-read/re-write the weights).

    Weights are stored pre-transposed: [in_features, out_features].
    Returns (w1c, b1_2d, w2c, b2_2d).
    """
    return (w1.astype(compute_dtype),
            b1.reshape(1, -1).astype(jnp.float32),
            w2.astype(compute_dtype),
            b2.reshape(1, -1).astype(jnp.float32))


def _pick_batch_block(B, max_block=1024):
    """Batch tile: one fat step for small B; for large B an even number of
    steps >= 4 so a v7x megacore split amortizes the weight DMA per core."""
    if B <= max_block:
        return B
    n_steps = max(4, 2 * pl.cdiv(B, 2 * max_block))
    tb = pl.cdiv(B, n_steps)
    return max(8, ((tb + 7) // 8) * 8)     # sublane-align


def timestep_embedding(sample, w1c, b1_2d, w2c, b2_2d, *, block_b=None,
                       out_dtype=None):
    """sample: [B, in_channels] (any float dtype).
    w1c: [C, H] bf16; b1_2d: [1, H] f32; w2c: [H, H] bf16; b2_2d: [1, H] f32
    (as produced by prepare_params).  out_dtype defaults to sample.dtype;
    pass jnp.bfloat16 if the consumer accepts it to halve output writeback.
    """
    B, C = sample.shape
    H = w1c.shape[1]
    compute_dtype = w1c.dtype
    out_dtype = sample.dtype if out_dtype is None else out_dtype

    x = sample.astype(compute_dtype)

    tb = _pick_batch_block(B) if block_b is None else min(block_b, B)
    n_steps = pl.cdiv(B, tb)
    grid = (n_steps,)

    # VMEM budget (accurate): x/out blocks are double-buffered by the
    # pipeliner; w1/w2/biases are grid-invariant (index (0,0) every step) and
    # effectively single-buffered after the first fetch -> count x1.  Add a
    # small headroom for Mosaic internal scratch; do NOT clamp up to 32-64 MiB.
    in_itemsize = jnp.dtype(compute_dtype).itemsize
    out_itemsize = jnp.dtype(out_dtype).itemsize
    vmem_bytes = (2 * (tb * C * in_itemsize + tb * H * out_itemsize)  # x, out
                  + (C * H + H * H) * in_itemsize                     # w1, w2
                  + 2 * H * 4)                                        # biases
    vmem_limit = int(vmem_bytes + (4 << 20))

    cost = pl.CostEstimate(
        flops=2 * B * C * H + 2 * B * H * H,
        transcendentals=B * H,                       # one tanh per element
        bytes_accessed=(B * C * in_itemsize
                        + (C * H + H * H) * in_itemsize
                        + 2 * H * 4
                        + B * H * out_itemsize),
    )

    # Single-step grid: no megacore split (second TC would idle / duplicate
    # the weight DMA).  Multi-step grid: split batch steps across TCs.
    semantics = ("arbitrary",) if n_steps == 1 else ("parallel",)

    return pl.pallas_call(
        _timestep_embedding_kernel,
        out_shape=jax.ShapeDtypeStruct((B, H), out_dtype),
        grid=grid,
        in_specs=[
            pl.BlockSpec((tb, C), lambda i: (i, 0)),   # x: tiled over batch
            pl.BlockSpec((C, H), lambda i: (0, 0)),    # w1: VMEM-resident
            pl.BlockSpec((1, H), lambda i: (0, 0)),    # b1
            pl.BlockSpec((H, H), lambda i: (0, 0)),    # w2: VMEM-resident
            pl.BlockSpec((1, H), lambda i: (0, 0)),    # b2
        ],
        out_specs=pl.BlockSpec((tb, H), lambda i: (i, 0)),
        compiler_params=pltpu.CompilerParams(
            dimension_semantics=semantics,
            vmem_limit_bytes=vmem_limit,
        ),
        cost_estimate=cost,
    )(x, w1c, b1_2d, w2c, b2_2d)


def _reference(sample, w1, b1, w2, b2, compute_dtype=jnp.bfloat16):
    # Mirror the kernel's bf16 quantization of x / weights / mid-activation so
    # the comparison isolates kernel correctness (not bf16 rounding).
    x = sample.astype(compute_dtype).astype(jnp.float32)
    w1c = w1.astype(compute_dtype).astype(jnp.float32)
    w2c = w2.astype(compute_dtype).astype(jnp.float32)
    h = x @ w1c + b1
    h = h * jax.nn.sigmoid(h)
    h = h.astype(compute_dtype).astype(jnp.float32)
    return (h @ w2c + b2).astype(sample.dtype)


if __name__ == "__main__":
    # Small shapes consistent with the module's forward: sample [B, in_channels]
    in_channels = 32
    time_embed_dim = 128

    key = jax.random.PRNGKey(0)
    k_x, k_w1, k_b1, k_w2, k_b2, k_x2, k_x3 = jax.random.split(key, 7)

    # Deterministic init mimicking torch.nn.Linear (uniform +/-1/sqrt(fan_in)),
    # stored as [in_features, out_features] (PyTorch weight transposed).
    bound1 = 1.0 / math.sqrt(in_channels)
    w1 = jax.random.uniform(k_w1, (in_channels, time_embed_dim),
                            minval=-bound1, maxval=bound1, dtype=jnp.float32)
    b1 = jax.random.uniform(k_b1, (time_embed_dim,),
                            minval=-bound1, maxval=bound1, dtype=jnp.float32)

    bound2 = 1.0 / math.sqrt(time_embed_dim)
    w2 = jax.random.uniform(k_w2, (time_embed_dim, time_embed_dim),
                            minval=-bound2, maxval=bound2, dtype=jnp.float32)
    b2 = jax.random.uniform(k_b2, (time_embed_dim,),
                            minval=-bound2, maxval=bound2, dtype=jnp.float32)

    # Cast / reshape parameters ONCE (hoisted out of the hot path).
    w1c, b1_2d, w2c, b2_2d = prepare_params(w1, b1, w2, b2)

    # --- case 1: tiny batch (single full-B grid step) ---
    B = 2
    sample = jax.random.normal(k_x, (B, in_channels), dtype=jnp.float32)
    out = jax.block_until_ready(
        timestep_embedding(sample, w1c, b1_2d, w2c, b2_2d))
    ref = _reference(sample, w1, b1, w2, b2)
    assert out.shape == (B, time_embed_dim)
    assert out.dtype == sample.dtype
    assert jnp.allclose(out, ref, atol=3e-2, rtol=3e-2), "mismatch (B=2)"

    # --- case 2: moderate batch, still a single fat grid step ---
    B2 = 256
    sample2 = jax.random.normal(k_x2, (B2, in_channels), dtype=jnp.float32)
    out2 = jax.block_until_ready(
        timestep_embedding(sample2, w1c, b1_2d, w2c, b2_2d))
    ref2 = _reference(sample2, w1, b1, w2, b2)
    assert out2.shape == (B2, time_embed_dim)
    assert jnp.allclose(out2, ref2, atol=3e-2, rtol=3e-2), "mismatch (B=256)"

    # --- case 3: large batch exercising the multi-step (megacore-friendly)
    #     pipelined grid (tb=512 -> 4 even steps) ---
    B3 = 2048
    sample3 = jax.random.normal(k_x3, (B3, in_channels), dtype=jnp.float32)
    out3 = jax.block_until_ready(
        timestep_embedding(sample3, w1c, b1_2d, w2c, b2_2d))
    ref3 = _reference(sample3, w1, b1, w2, b2)
    assert out3.shape == (B3, time_embed_dim)
    assert jnp.allclose(out3, ref3, atol=3e-2, rtol=3e-2), "mismatch (B=2048)"

    print("KERNEL_OK")
</pallas_src>

<mosaic_0001>
module attributes {stable_mosaic.version = 11 : i64} {
  func.func @_timestep_embedding_kernel(%arg0: i32, %arg1: memref<2x32xbf16, #tpu.memory_space<vmem>>, %arg2: memref<32x128xbf16, #tpu.memory_space<vmem>>, %arg3: memref<1x128xf32, #tpu.memory_space<vmem>>, %arg4: memref<128x128xbf16, #tpu.memory_space<vmem>>, %arg5: memref<1x128xf32, #tpu.memory_space<vmem>>, %arg6: memref<2x128xf32, #tpu.memory_space<vmem>>) attributes {dimension_semantics = [#tpu.dimension_semantics<arbitrary>], iteration_bounds = array<i64: 1>, scalar_prefetch = 0 : i64, scratch_operands = 0 : i64, tpu.core_type = #tpu.core_type<tc>, window_params = [{transform_indices = @transform_0, window_bounds = array<i64: 2, 32>}, {pipeline_mode = #tpu.pipeline_mode<synchronous>, transform_indices = @transform_1, window_bounds = array<i64: 32, 128>}, {pipeline_mode = #tpu.pipeline_mode<synchronous>, transform_indices = @transform_2, window_bounds = array<i64: 1, 128>}, {pipeline_mode = #tpu.pipeline_mode<synchronous>, transform_indices = @transform_3, window_bounds = array<i64: 128, 128>}, {pipeline_mode = #tpu.pipeline_mode<synchronous>, transform_indices = @transform_4, window_bounds = array<i64: 1, 128>}, {transform_indices = @transform_5, window_bounds = array<i64: 2, 128>}]} {
    %c0 = arith.constant 0 : index
    %c0_0 = arith.constant 0 : index
    %0 = vector.load %arg1[%c0, %c0_0] : memref<2x32xbf16, #tpu.memory_space<vmem>>, vector<2x32xbf16>
    %c0_1 = arith.constant 0 : index
    %c0_2 = arith.constant 0 : index
    %1 = vector.load %arg2[%c0_1, %c0_2] : memref<32x128xbf16, #tpu.memory_space<vmem>>, vector<32x128xbf16>
    %cst = arith.constant dense<0.000000e+00> : vector<2x128xf32>
    %2 = tpu.matmul %0, %1, %cst {dimension_numbers = #tpu.dot_dimension_numbers<[1], [0], [0], [1], [0, 0, 1, 1], [], []>} : vector<2x32xbf16>, vector<32x128xbf16>, vector<2x128xf32> -> vector<2x128xf32>
    %c0_3 = arith.constant 0 : index
    %c0_4 = arith.constant 0 : index
    %3 = vector.load %arg3[%c0_3, %c0_4] : memref<1x128xf32, #tpu.memory_space<vmem>>, vector<1x128xf32>
    %4 = vector.broadcast %3 : vector<1x128xf32> to vector<2x128xf32>
    %5 = arith.addf %2, %4 : vector<2x128xf32>
    %cst_5 = arith.constant 5.000000e-01 : f32
    %6 = vector.broadcast %cst_5 : f32 to vector<2x128xf32>
    %7 = arith.mulf %6, %5 : vector<2x128xf32>
    %8 = math.tanh %7 : vector<2x128xf32>
    %cst_6 = arith.constant 5.000000e-01 : f32
    %9 = vector.broadcast %cst_6 : f32 to vector<2x128xf32>
    %10 = arith.mulf %9, %8 : vector<2x128xf32>
    %cst_7 = arith.constant 5.000000e-01 : f32
    %11 = vector.broadcast %cst_7 : f32 to vector<2x128xf32>
    %12 = arith.addf %10, %11 : vector<2x128xf32>
    %13 = arith.mulf %5, %12 : vector<2x128xf32>
    %14 = arith.truncf %13 : vector<2x128xf32> to vector<2x128xbf16>
    %c0_8 = arith.constant 0 : index
    %c0_9 = arith.constant 0 : index
    %15 = vector.load %arg4[%c0_8, %c0_9] : memref<128x128xbf16, #tpu.memory_space<vmem>>, vector<128x128xbf16>
    %cst_10 = arith.constant dense<0.000000e+00> : vector<2x128xf32>
    %16 = tpu.matmul %14, %15, %cst_10 {dimension_numbers = #tpu.dot_dimension_numbers<[1], [0], [0], [1], [0, 0, 1, 1], [], []>} : vector<2x128xbf16>, vector<128x128xbf16>, vector<2x128xf32> -> vector<2x128xf32>
    %c0_11 = arith.constant 0 : index
    %c0_12 = arith.constant 0 : index
    %17 = vector.load %arg5[%c0_11, %c0_12] : memref<1x128xf32, #tpu.memory_space<vmem>>, vector<1x128xf32>
    %18 = vector.broadcast %17 : vector<1x128xf32> to vector<2x128xf32>
    %19 = arith.addf %16, %18 : vector<2x128xf32>
    %c0_13 = arith.constant 0 : index
    %c0_14 = arith.constant 0 : index
    %20 = vector.load %arg6[%c0_13, %c0_14] : memref<2x128xf32, #tpu.memory_space<vmem>>, vector<2x128xf32>
    tpu.vector_store %arg6[%c0_13, %c0_14], %19 {strides = array<i32>} : memref<2x128xf32, #tpu.memory_space<vmem>>, vector<2x128xf32>,
    return
  }
  func.func @transform_0(%arg0: i32) -> (i32, i32) {
    %c0_i32 = arith.constant 0 : i32
    %c0_i32_0 = arith.constant 0 : i32
    return %arg0, %c0_i32 : i32, i32
  }
  func.func @transform_1(%arg0: i32) -> (i32, i32) {
    %c0_i32 = arith.constant 0 : i32
    %c0_i32_0 = arith.constant 0 : i32
    %c0_i32_1 = arith.constant 0 : i32
    return %c0_i32, %c0_i32_0 : i32, i32
  }
  func.func @transform_2(%arg0: i32) -> (i32, i32) {
    %c0_i32 = arith.constant 0 : i32
    %c0_i32_0 = arith.constant 0 : i32
    %c0_i32_1 = arith.constant 0 : i32
    return %c0_i32, %c0_i32_0 : i32, i32
  }
  func.func @transform_3(%arg0: i32) -> (i32, i32) {
    %c0_i32 = arith.constant 0 : i32
    %c0_i32_0 = arith.constant 0 : i32
    %c0_i32_1 = arith.constant 0 : i32
    return %c0_i32, %c0_i32_0 : i32, i32
  }
  func.func @transform_4(%arg0: i32) -> (i32, i32) {
    %c0_i32 = arith.constant 0 : i32
    %c0_i32_0 = arith.constant 0 : i32
    %c0_i32_1 = arith.constant 0 : i32
    return %c0_i32, %c0_i32_0 : i32, i32
  }
  func.func @transform_5(%arg0: i32) -> (i32, i32) {
    %c0_i32 = arith.constant 0 : i32
    %c0_i32_0 = arith.constant 0 : i32
    return %arg0, %c0_i32 : i32, i32
  }
}

</mosaic_0001>

<bundles_post_ra>
// kernel: tpu_custom_call.1
= control target key start
LH: loop header
LB: loop body
LE: loop exit
PB: predicated region body
PF: predicated region fallthrough
CT: control target
= control target key end

     0   :  { %10 = vsyncpa [#allocation3], 0  ;;  %s428_s0 = inlined_call_operand.hbm [shape: bf16[2,32], index: 0, kind: input, shape index: {}]   ;;  %s429_s1 = inlined_call_operand.hbm [shape: bf16[32,128], index: 1, kind: input, shape index: {}]   ;;  %s430_s2 = inlined_call_operand.vmem [shape: f32[1,128], index: 2, kind: input, shape index: {}]   ;;  %s431_s3 = inlined_call_operand.hbm [shape: bf16[128,128], index: 3, kind: input, shape index: {}]   ;;  %s432_s4 = inlined_call_operand.vmem [shape: f32[1,128], index: 4, kind: input, shape index: {}]   ;;  %s433_s5 = inlined_call_operand.hbm [shape: f32[2,128], index: 5, kind: output, shape index: {}]  }
   0x1   :  { %11 = vsyncpa [#allocation6], 0  ;;  %s28_s20 = sshll.u32 %s429_s1, 4  ;;  %s29_s20 = int_to_ptr.hbm [resolvable:$true] %s28_s20 }
   0x2   :  { %12 = vsyncpa [#allocation4], 0  ;;  %s374_s21 = smov [#allocation5]   ;;  %s18_s25 = sshll.u32 %s428_s0, 4  ;;  %s19_s25 = int_to_ptr.hbm [resolvable:$true] %s18_s25 }
   0x3   :  { %s30_s22 = sshll.u32 %s374_s21, 4  ;;  %s375_s26 = smov 64   ;;  %s31_s22 = int_to_ptr.vmem [resolvable:$true] %s30_s22 }
   0x4   :  { %s376_s27 = smov 4   ;;  %s377_s28 = smov [#allocation2]  }
   0x5   :  { %36 = dma.hbm_to_vmem [thread:$0]  %s29_s20, 256, %s31_s22, [#allocation6], %s375_s26, %s375_s26, %s376_s27  }
   0x6   :  { %s20_s29 = sshll.u32 %s377_s28, 4  ;;  %s43_s7 = sshll.u32 %s431_s3, 4  ;;  %s21_s29 = int_to_ptr.vmem [resolvable:$true] %s20_s29  ;;  %s44_s7 = int_to_ptr.hbm [resolvable:$true] %s43_s7 }
   0x7   :  { %23 = dma.hbm_to_vmem [thread:$0]  %s19_s25, 16, %s21_s29, [#allocation3]  }
   0x8   :  { %s378_s1 = smov [#allocation7]  }
   0x9   :  { %s45_s8 = sshll.u32 %s378_s1, 4  ;;  %s46_s8 = int_to_ptr.vmem [resolvable:$true] %s45_s8 }
   0xa   :  { %51 = dma.hbm_to_vmem [thread:$0]  %s44_s7, 1024, %s46_s8, [#allocation6], %s375_s26, %s375_s26, %s376_s27  }
   0xb   :  { %368 = dma.done.wait [#allocation3], 16  }
   0xc   :  { %369 = vsyncadd [#allocation3], 4294967280 }
   0xd   :  { %370 = dma.done.wait [#allocation6], 1280  }
   0xe   :  { %371 = vsyncadd [#allocation6], 4294966016  ;;  %v253_v0 = vld [vmem:[#allocation5 + $0x8] sm:$0xff]  ;;  %v252_v2 = vld [vmem:[#allocation5] sm:$0xff]  ;;  %vm88_vm0 = vcmask 261120   ;;  %s379_s11 = smov [#allocation8]  }
   0xf   :  { %v261_v1 = vld [vmem:[#allocation7 + $0x38] sm:$0xff]  ;;  %98 = vmatpush.bf16.msra.mxu0 %v253_v0  ;;  %v260_v3 = vld [vmem:[#allocation7 + $0x30] sm:$0xff]  ;;  %v67_v4 = vld [vmem:[#allocation2] sm:$0x1]  ;;  %s198_s12 = sshll.u32 %s379_s11, 4  ;;  %s199_s12 = int_to_ptr.vmem [resolvable:$true] %s198_s12 }
  0x10   :  { %179 = vmatpush.bf16.msra.mxu1 %v261_v1  ;;  %v259_v5 = vld [vmem:[#allocation7 + $0x28] sm:$0xff]  ;;  %v258_v6 = vld [vmem:[#allocation7 + $0x20] sm:$0xff]  ;;  %v257_v7 = vld [vmem:[#allocation7 + $0x18] sm:$0xff] }
  0x11   :  { %v256_v8 = vld [vmem:[#allocation7 + $0x10] sm:$0xff]  ;;  %v255_v9 = vld [vmem:[#allocation7 + $0x8] sm:$0xff]  ;;  %v254_v10 = vld [vmem:[#allocation7] sm:$0xff] }
  0x12   :  { %v268_v11 = vld [vmem:[%s430_s2] ss:$0 sm:$0xff]  ;;  %s200_s2 = sshll.u32 %s433_s5, 4  ;;  %s201_s2 = int_to_ptr.hbm [resolvable:$true] %s200_s2 }
  0x13   :  { %99 = vmatpush.bf16.msra.mxu0 %v252_v2  ;;  %v269_v21 = vld [vmem:[%s432_s4] ss:$0 sm:$0xff] }
  0x14   :  { %180 = vmatpush.bf16.msra.mxu1 %v260_v3 }
  0x16   :  { %219 = vmatmul.msk.bf16.vlgmr.msra.gmra.mxu0 %vm88_vm0, %v67_v4 }
  0x18   :  { %181 = vmatpush.bf16.msra.mxu1 %v259_v5 }
  0x1c   :  { %182 = vmatpush.bf16.msra.mxu1 %v258_v6 }
  0x20   :  { %183 = vmatpush.bf16.msra.mxu1 %v257_v7 }
  0x24   :  { %184 = vmatpush.bf16.msra.mxu1 %v256_v8 }
  0x28   :  { %185 = vmatpush.bf16.msra.mxu1 %v255_v9 }
  0x2c   :  { %186 = vmatpush.bf16.msra.mxu1 %v254_v10 }
  0x93   :  { %v101_v12 = vpop.f32.mrf.mxu0 }
  0x94   :  { %v102_v13 = vadd.f32 %v268_v11, %v101_v12 }
  0x96   :  { %v105_v14 = vmul.f32 0.5, %v102_v13 }
  0x98   :  { %270 = vtanh.f32 %v105_v14 }
  0x9b   :  { %v103_v15 = vpop.f32.mrf.mxu0 }
  0x9e   :  { %v271_v16 = vpop.eup %270 }
  0x9f   :  { %v107_v17 = vmul.f32 0.5, %v271_v16 }
  0xa1   :  { %v108_v18 = vadd.f32 0.5, %v107_v17 }
  0xa3   :  { %v109_v19 = vmul.f32 %v108_v18, %v102_v13 }
  0xa5   :  { %v110_v20 = vpack.c.bf16 %v109_v19, %v109_v19 }
  0xa7   :  { %187 = vmatmul.bf16.vlgmr.msra.gmra.mxu1 %v110_v20 }
 0x124   :  { %v188_v22 = vpop.f32.mrf.mxu1 }
 0x125   :  { %v189_v23 = vadd.f32 %v269_v21, %v188_v22 }
 0x127   :  { %192 = vst [vmem:[#allocation8] sm:$0x3] %v189_v23 }
 0x128   :  { %203 = dma.vmem_to_hbm [thread:$0]  %s199_s12, 32, %s201_s2, [#allocation4]  }
 0x12c   :  { %v190_v24 = vpop.f32.mrf.mxu1 }
 0x12d   :  { %372 = dma.done.wait [#allocation4], 32  }
 0x12e   :  { %373 = vsyncadd [#allocation4], 4294967264 }
 0x12f   :  { %208 = vsyncpa [#allocation3], 1 }
 0x130   :  { %209 = vsyncpa [#allocation6], 1 }
 0x131   :  { %210 = vsyncpa [#allocation4], 1 }

</bundles_post_ra>
